<compile_context>
chip_gen: v7x
topology: tpu7x:2x2x1
jax: 0.10.0
libtpu: 0.0.40
codegen_flags: <defaults>
</compile_context>

<pallas_src>
import jax
import jax.numpy as jnp
from jax.experimental import pallas as pl
from jax.experimental.pallas import tpu as pltpu


# ---------------------------------------------------------------------------
# Host-side helpers
# ---------------------------------------------------------------------------
def _round_up(x, m):
    return ((x + m - 1) // m) * m


def _cdiv(a, b):
    return (a + b - 1) // b


def _vmem_budgets():
    """Return (block-sizing budget, scoped vmem_limit_bytes), generation-aware."""
    cap = 64 * 1024 * 1024  # conservative default (v7x physical VMEM)
    try:
        info = pltpu.get_tpu_info()
        c = getattr(info, "vmem_capacity_bytes", None)
        if c:
            cap = int(c)
    except Exception:
        pass
    if cap >= 128 * 1024 * 1024:               # v5e / v6e: 128 MiB physical
        return 64 * 1024 * 1024, 100 * 1024 * 1024
    return 32 * 1024 * 1024, 48 * 1024 * 1024  # v7x: 64 MiB physical


def _compiler_params(sem, vmem_limit):
    return pltpu.CompilerParams(
        dimension_semantics=sem,
        vmem_limit_bytes=vmem_limit,
    )


# ---------------------------------------------------------------------------
# Kernels
# ---------------------------------------------------------------------------
def _softmax_dim0_kernel(x_ref, o_ref):
    """Single-pass: full reduction axis (axis 0) resident in the block."""
    x = x_ref[...].astype(jnp.float32)
    x_exp = jnp.exp(x)                          # NOTE: no max-subtraction, matches module
    total = jnp.sum(x_exp, axis=0, keepdims=True)
    inv = pl.reciprocal(total, approx=False)    # exact; amortized over all S rows
    o_ref[...] = (x_exp * inv).astype(o_ref.dtype)


def _make_colsum_kernel(S, tile_s):
    """Pass 1 (large-S path): per-column exp-sums accumulated over S tiles.

    The finalize step converts the sums to reciprocals in place, so pass 2 is
    exp + multiply only.  Partial last S tile is masked (OOB rows -> 0).
    """
    mask_tail = (S % tile_s) != 0

    def kernel(x_ref, inv_ref):
        s_idx = pl.program_id(1)

        @pl.when(s_idx == 0)
        def _init():
            inv_ref[...] = jnp.zeros_like(inv_ref)

        x_exp = jnp.exp(x_ref[...].astype(jnp.float32))
        if mask_tail:
            rows = jax.lax.broadcasted_iota(jnp.int32, x_exp.shape, 0) + s_idx * tile_s
            x_exp = jnp.where(rows < S, x_exp, 0.0)
        inv_ref[...] += jnp.sum(x_exp, axis=0, keepdims=True)

        @pl.when(s_idx == pl.num_programs(1) - 1)
        def _finalize():
            inv_ref[...] = pl.reciprocal(inv_ref[...], approx=False)

    return kernel


def _exp_scale_kernel(x_ref, inv_ref, o_ref):
    """Pass 2 (large-S path): exp(x) * precomputed 1/colsum."""
    x_exp = jnp.exp(x_ref[...].astype(jnp.float32))
    o_ref[...] = (x_exp * inv_ref[...]).astype(o_ref.dtype)


# ---------------------------------------------------------------------------
# pallas_call wrappers
# ---------------------------------------------------------------------------
def _single_pass(x, tile_h, vmem_limit):
    S, H = x.shape
    return pl.pallas_call(
        _softmax_dim0_kernel,
        out_shape=jax.ShapeDtypeStruct((S, H), x.dtype),
        grid_spec=pltpu.PrefetchScalarGridSpec(
            num_scalar_prefetch=0,
            grid=(_cdiv(H, tile_h),),
            in_specs=[pl.BlockSpec((S, tile_h), lambda j: (0, j))],
            out_specs=pl.BlockSpec((S, tile_h), lambda j: (0, j)),
        ),
        compiler_params=_compiler_params(("parallel",), vmem_limit),
    )(x)


def _two_pass(x, tile_h, tile_s, vmem_limit):
    S, H = x.shape
    grid = (_cdiv(H, tile_h), _cdiv(S, tile_s))

    # Pass 1: per-column exp-sums (reduction axis S last, accumulator output),
    # reciprocal taken once in the finalize step.
    inv_sums = pl.pallas_call(
        _make_colsum_kernel(S, tile_s),
        out_shape=jax.ShapeDtypeStruct((1, H), jnp.float32),
        grid_spec=pltpu.PrefetchScalarGridSpec(
            num_scalar_prefetch=0,
            grid=grid,
            in_specs=[pl.BlockSpec((tile_s, tile_h), lambda h, s: (s, h))],
            out_specs=pl.BlockSpec((1, tile_h), lambda h, s: (0, h)),
        ),
        compiler_params=_compiler_params(("parallel", "arbitrary"), vmem_limit),
    )(x)

    # Pass 2: exp(x) * inv_colsum (both grid axes independent).
    # TODO(synk): could be fused with pass 1 into one pallas_call (phase on the
    # S axis, (1, tile_h) VMEM scratch) to drop the (1, H) HBM round trip.
    return pl.pallas_call(
        _exp_scale_kernel,
        out_shape=jax.ShapeDtypeStruct((S, H), x.dtype),
        grid_spec=pltpu.PrefetchScalarGridSpec(
            num_scalar_prefetch=0,
            grid=grid,
            in_specs=[
                pl.BlockSpec((tile_s, tile_h), lambda h, s: (s, h)),
                pl.BlockSpec((1, tile_h), lambda h, s: (0, h)),
            ],
            out_specs=pl.BlockSpec((tile_s, tile_h), lambda h, s: (s, h)),
        ),
        compiler_params=_compiler_params(("parallel", "parallel"), vmem_limit),
    )(x, inv_sums)


def my_softmax(x: jax.Array, *, max_resident_bytes: int | None = None) -> jax.Array:
    """exp(x) / exp(x).sum(axis=0, keepdims=True) over a (S, H) array."""
    S, H = x.shape
    size_budget, vmem_limit = _vmem_budgets()
    if max_resident_bytes is not None:
        size_budget = max_resident_bytes

    isz = jnp.dtype(x.dtype).itemsize
    # Rough per-element VMEM factor: 2x input double-buffer + 2x output + ~2 f32 temps.
    factor = 2 * isz + 2 * isz + 8
    sub = {4: 8, 2: 16, 1: 32}.get(isz, 8)     # dtype-aware sublane granularity

    # --- single-pass path: full S axis resident per block -------------------
    max_lane_fit = size_budget // max(1, S * factor)   # widest H-tile that fits
    if max_lane_fit >= min(H, 128):
        if H <= 512 and H <= max_lane_fit:
            tile_h = H                                  # tiny: one block, no grid overhead
        else:
            tile_h = min((max_lane_fit // 128) * 128, _round_up(H, 128))
            if tile_h > 512:
                # Keep >=~4 grid steps for DMA pipelining / v7x 2-TC split,
                # while staying >=512 lanes (already ~85% of HBM roofline).
                tile_h = min(tile_h, max(512, _round_up(_cdiv(H, 4), 128)))
        return _single_pass(x, tile_h, vmem_limit)

    # --- two-pass path for large S (full S block would blow the VMEM budget) -
    tile_h = H if H <= 512 else 512                     # wide, lane-dense tile for DMA contiguity
    max_s = size_budget // (tile_h * factor)
    tile_s = max(sub, (max_s // sub) * sub)
    if tile_s >= S:
        tile_s = S
    return _two_pass(x, tile_h, tile_s, vmem_limit)


# ---------------------------------------------------------------------------
# Demo / correctness checks
# ---------------------------------------------------------------------------
def _ref_softmax(x):
    x_exp = jnp.exp(x.astype(jnp.float32))
    return x_exp / jnp.sum(x_exp, axis=0, keepdims=True)


if __name__ == "__main__":
    key = jax.random.PRNGKey(0)
    k1, k2, k3, k4, k5 = jax.random.split(key, 5)

    # 1) Small (seq, hidden) shape implied by the module's forward: single block.
    x1 = jax.random.normal(k1, (8, 256), dtype=jnp.float32)
    o1 = jax.block_until_ready(my_softmax(x1))
    assert o1.shape == x1.shape and o1.dtype == x1.dtype
    assert jnp.allclose(o1, _ref_softmax(x1), rtol=1e-6, atol=1e-6), "single-pass mismatch"

    # 2) Non-multiple-of-128 H: cdiv tiling with a partial last lane block.
    x2 = jax.random.normal(k2, (16, 1000), dtype=jnp.float32)
    o2 = jax.block_until_ready(my_softmax(x2))
    assert jnp.allclose(o2, _ref_softmax(x2), rtol=1e-6, atol=1e-6), "partial-H mismatch"

    # 3) Forced two-pass path (tiny sizing budget), divisible tiles.
    x3 = jax.random.normal(k3, (64, 256), dtype=jnp.float32)
    o3 = jax.block_until_ready(my_softmax(x3, max_resident_bytes=32 * 1024))
    assert jnp.allclose(o3, _ref_softmax(x3), rtol=1e-6, atol=1e-6), "two-pass mismatch"

    # 4) Forced two-pass path with ragged S and H (partial tiles + tail masking).
    x4 = jax.random.normal(k4, (50, 200), dtype=jnp.float32)
    o4 = jax.block_until_ready(my_softmax(x4, max_resident_bytes=16 * 1024))
    assert jnp.allclose(o4, _ref_softmax(x4), rtol=1e-6, atol=1e-6), "ragged two-pass mismatch"

    # 5) bf16 input (f32 compute, bf16 store).
    x5 = jax.random.normal(k5, (8, 256), dtype=jnp.bfloat16)
    o5 = jax.block_until_ready(my_softmax(x5))
    assert o5.dtype == jnp.bfloat16
    assert jnp.allclose(o5.astype(jnp.float32), _ref_softmax(x5),
                        rtol=2e-2, atol=1e-2), "bf16 mismatch"

    print("KERNEL_OK")
</pallas_src>

<mosaic_0001>
module attributes {stable_mosaic.version = 11 : i64} {
  func.func @_softmax_dim0_kernel(%arg0: i32, %arg1: memref<8x256xf32, #tpu.memory_space<vmem>>, %arg2: memref<8x256xf32, #tpu.memory_space<vmem>>) attributes {dimension_semantics = [#tpu.dimension_semantics<parallel>], iteration_bounds = array<i64: 1>, scalar_prefetch = 0 : i64, scratch_operands = 0 : i64, tpu.core_type = #tpu.core_type<tc>, window_params = [{transform_indices = @transform_0, window_bounds = array<i64: 8, 256>}, {transform_indices = @transform_1, window_bounds = array<i64: 8, 256>}]} {
    %c0 = arith.constant 0 : index
    %c0_0 = arith.constant 0 : index
    %0 = vector.load %arg1[%c0, %c0_0] : memref<8x256xf32, #tpu.memory_space<vmem>>, vector<8x256xf32>
    %1 = math.exp %0 : vector<8x256xf32>
    %cst = arith.constant dense<0.000000e+00> : vector<256xf32>
    %2 = vector.multi_reduction <add>, %1, %cst [0] : vector<8x256xf32> to vector<256xf32>
    %3 = vector.shape_cast %2 : vector<256xf32> to vector<1x256xf32>
    %4 = tpu.reciprocal %3 : vector<1x256xf32> -> vector<1x256xf32>
    %5 = vector.broadcast %4 : vector<1x256xf32> to vector<8x256xf32>
    %6 = arith.mulf %1, %5 : vector<8x256xf32>
    %c0_1 = arith.constant 0 : index
    %c0_2 = arith.constant 0 : index
    %7 = vector.load %arg2[%c0_1, %c0_2] : memref<8x256xf32, #tpu.memory_space<vmem>>, vector<8x256xf32>
    tpu.vector_store %arg2[%c0_1, %c0_2], %6 {strides = array<i32>} : memref<8x256xf32, #tpu.memory_space<vmem>>, vector<8x256xf32>,
    return
  }
  func.func @transform_0(%arg0: i32) -> (i32, i32) {
    %c0_i32 = arith.constant 0 : i32
    %c0_i32_0 = arith.constant 0 : i32
    return %c0_i32, %arg0 : i32, i32
  }
  func.func @transform_1(%arg0: i32) -> (i32, i32) {
    %c0_i32 = arith.constant 0 : i32
    %c0_i32_0 = arith.constant 0 : i32
    return %c0_i32, %arg0 : i32, i32
  }
}

</mosaic_0001>

<bundles_post_ra>
// kernel: tpu_custom_call.1
= control target key start
LH: loop header
LB: loop body
LE: loop exit
PB: predicated region body
PF: predicated region fallthrough
CT: control target
= control target key end

     0   :  { %6 = vsyncpa [#allocation3], 0  ;;  %s154_s0 = inlined_call_operand.hbm [shape: f32[8,256], index: 0, kind: input, shape index: {}]   ;;  %s155_s1 = inlined_call_operand.hbm [shape: f32[8,256], index: 1, kind: output, shape index: {}]  }
   0x1   :  { %7 = vsyncpa [#allocation4], 0  ;;  %s118_s6 = smov [#allocation2]   ;;  %s70_s10 = scalar_lea.hbm %s154_s0, 256 }
   0x2   :  { %s14_s7 = sshll.u32 %s118_s6, 4  ;;  %p71_p0 = scmp.ne.s32.totalorder %s154_s0, %s70_s10  ;;  %s15_s7 = int_to_ptr.vmem [resolvable:$true] %s14_s7 }
   0x3   :  { %p74_p1 = scmp.lt.u32.totalorder %s70_s10, %s154_s0 }
   0x5   :  { %p76_p2 = pnand %p74_p1, %p71_p0 }
   0x7   :  { %79 = shalt.err (!%p76_p2)
}
   0x8   :  { %s80_s15 = scalar_lea.vmem %s15_s7, 256  ;;  %p85_p4 = scmp.lt.s32.totalorder %s15_s7, %s15_s7 }
   0x9   :  { %p81_p3 = scmp.ne.s32.totalorder %s15_s7, %s80_s15  ;;  %p86_p5 = scmp.lt.s32.totalorder %s80_s15, %s80_s15 }
   0xb   :  { %p87_p6 = por %p86_p5, %p85_p4 }
   0xd   :  { %p88_p7 = pnand %p87_p6, %p81_p3 }
   0xf   :  { %91 = shalt.err (!%p88_p7)
}
  0x10   :  { %17 = dma.hbm_to_vmem [thread:$0]  %s154_s0, 256, %s15_s7, [#allocation3]  }
  0x11   :  { %114 = dma.done.wait [#allocation3], 256  }
  0x12   :  { %115 = vsyncadd [#allocation3], 4294967040  ;;  %v21_v0 = vld [vmem:[#allocation2] sm:$0xff]  ;;  %v22_v1 = vld [vmem:[#allocation2 + $0x8] sm:$0xff]  ;;  %s119_s0 = smov [#allocation5]  }
  0x13   :  { %v23_v2 = vmul.f32 1.442695, %v21_v0  ;;  %v25_v3 = vmul.f32 1.442695, %v22_v1  ;;  %s51_s18 = sshll.u32 %s119_s0, 4  ;;  %s52_s18 = int_to_ptr.vmem [resolvable:$true] %s51_s18 }
  0x14   :  { %s92_s19 = scalar_lea.vmem %s52_s18, 256  ;;  %p97_p9 = scmp.lt.s32.totalorder %s52_s18, %s52_s18 }
  0x15   :  { %62 = vpow2.f32 %v23_v2  ;;  %p93_p8 = scmp.ne.s32.totalorder %s52_s18, %s92_s19  ;;  %p98_p10 = scmp.lt.s32.totalorder %s92_s19, %s92_s19 }
  0x16   :  { %64 = vpow2.f32 %v25_v3 }
  0x17   :  { %p99_p11 = por %p98_p10, %p97_p9 }
  0x19   :  { %p100_p12 = pnand %p99_p11, %p93_p8 }
  0x1f   :  { %v63_v4 = vpop.eup %62 }
  0x20   :  { %v65_v5 = vpop.eup %64  ;;  %v27_v6 = vrot.slane %v63_v4, 4 }
  0x21   :  { %v33_v7 = vrot.slane %v65_v5, 4 }
  0x22   :  { %v28_v8 = vadd.f32 %v63_v4, %v27_v6 }
  0x23   :  { %v34_v9 = vadd.f32 %v65_v5, %v33_v7 }
  0x24   :  { %v29_v10 = vrot.slane %v28_v8, 2 }
  0x25   :  { %v35_v11 = vrot.slane %v34_v9, 2 }
  0x26   :  { %v30_v12 = vadd.f32 %v29_v10, %v28_v8 }
  0x27   :  { %v36_v13 = vadd.f32 %v35_v11, %v34_v9 }
  0x28   :  { %v31_v14 = vrot.slane %v30_v12, 1 }
  0x29   :  { %v37_v15 = vrot.slane %v36_v13, 1 }
  0x2a   :  { %v32_v16 = vadd.f32 %v31_v14, %v30_v12 }
  0x2b   :  { %v38_v17 = vadd.f32 %v37_v15, %v36_v13 }
  0x2c   :  { %66 = vrcp.f32 %v32_v16 }
  0x2d   :  { %68 = vrcp.f32 %v38_v17 }
  0x36   :  { %v67_v18 = vpop.eup %66 }
  0x37   :  { %v69_v19 = vpop.eup %68  ;;  %v41_v20 = vmul.f32 %v67_v18, %v63_v4 }
  0x38   :  { %v42_v21 = vmul.f32 %v69_v19, %v65_v5 }
  0x39   :  { %43 = vst [vmem:[#allocation5] sm:$0xff] %v41_v20 }
  0x3a   :  { %44 = vst [vmem:[#allocation5 + $0x8] sm:$0xff] %v42_v21 }
  0x3b   :  { %103 = shalt.err (!%p100_p12)
}
  0x3c   :  { %s104_s22 = scalar_lea.hbm %s155_s1, 256 }
  0x3d   :  { %p105_p13 = scmp.ne.s32.totalorder %s155_s1, %s104_s22  ;;  %p108_p0 = scmp.lt.u32.totalorder %s104_s22, %s155_s1 }
  0x3f   :  { %p110_p1 = pnand %p108_p0, %p105_p13 }
  0x41   :  { %113 = shalt.err (!%p110_p1)
}
  0x42   :  { %54 = dma.vmem_to_hbm [thread:$0]  %s52_s18, 256, %s155_s1, [#allocation4]  }
  0x43   :  { %116 = dma.done.wait [#allocation4], 256  }
  0x44   :  { %117 = vsyncadd [#allocation4], 4294967040 }
  0x45   :  { %58 = vsyncpa [#allocation3], 1 }
  0x46   :  { %59 = vsyncpa [#allocation4], 1 }

</bundles_post_ra>
